<compile_context>
chip_gen: v7x
topology: tpu7x:2x2x1
jax: 0.10.0
libtpu: 0.0.40
codegen_flags: <defaults>
</compile_context>

<pallas_src>
import functools

import jax
import jax.numpy as jnp
from jax.experimental import pallas as pl
from jax.experimental.pallas import tpu as pltpu


def _round_up(a, b):
    return (a + b - 1) // b * b


# ----------------------------- Pallas kernel -------------------------------

def hahow_kernel(bn_ref, w123_ref, w4_ref, x_ref, out_ref):
    bn = bn_ref[...]                         # (8, F) f32: rows 0..4 used
    s1 = bn[0:1, :]
    b1 = bn[1:2, :]
    b2 = bn[2:3, :]
    b3 = bn[3:4, :]
    b4 = bn[4:5, :]

    h = x_ref[...].astype(jnp.float32)

    # layer1: BN1 (+Dropout(eval)=id) + ReLU, Linear1 (BN2 scale pre-folded
    # into its output columns)
    h = jnp.maximum(h * s1 + b1, 0.0)
    h = jnp.dot(h.astype(jnp.bfloat16), w123_ref[0],
                preferred_element_type=jnp.float32)
    # layer2: (scale already folded) shift + ReLU, Linear2 (BN3 scale folded)
    h = jnp.maximum(h + b2, 0.0)
    h = jnp.dot(h.astype(jnp.bfloat16), w123_ref[1],
                preferred_element_type=jnp.float32)
    # layer3: shift + ReLU, Linear3 (BN4 scale folded)
    h = jnp.maximum(h + b3, 0.0)
    h = jnp.dot(h.astype(jnp.bfloat16), w123_ref[2],
                preferred_element_type=jnp.float32)
    # layer4: shift + ReLU, Linear4
    h = jnp.maximum(h + b4, 0.0)
    h = jnp.dot(h.astype(jnp.bfloat16), w4_ref[...],
                preferred_element_type=jnp.float32)

    out_ref[...] = h.astype(out_ref.dtype)


# ------------------------------ JAX wrapper ---------------------------------

def prepare_params(params, eps=1e-5):
    """One-time fold of BN stats + weight transpose/pack/bf16-cast.

    Returns:
      bn   : (8, F) f32  rows: [s1, b1, b2, b3, b4, 0, 0, 0]
      w123 : (3, F, F) bf16  Linear1..3 weights transposed to (in, out), with
             the *next* layer's BN scale folded into the output columns.
      w4   : (F, C) bf16  Linear4 weight transposed to (in, out).
    """
    f = params[0]["weight"].shape[1]
    scales, shifts = [], []
    for p in params:
        sc = p["gamma"] / jnp.sqrt(p["var"] + eps)
        sh = p["beta"] - p["mean"] * sc
        scales.append(sc)
        shifts.append(sh)

    ws = [p["weight"].T for p in params]          # each (in, out)
    for i in range(3):                            # fold BN_{i+2} scale into W_{i+1}
        ws[i] = ws[i] * scales[i + 1][None, :]

    bn = jnp.zeros((8, f), jnp.float32)
    bn = bn.at[0].set(scales[0])
    bn = bn.at[1].set(shifts[0])
    bn = bn.at[2].set(shifts[1])
    bn = bn.at[3].set(shifts[2])
    bn = bn.at[4].set(shifts[3])

    w123 = jnp.stack(ws[:3]).astype(jnp.bfloat16)     # (3, F, F)
    w4 = ws[3].astype(jnp.bfloat16)                   # (F, C)
    return bn, w123, w4


@functools.partial(jax.jit, static_argnames=("tile_n",))
def hahow_forward(x, bn, w123, w4, *, tile_n=512):
    n, f = x.shape
    c = w4.shape[1]

    # Batch tile: multiple of 8 sublanes, capped at tile_n; pad the batch up
    # to a multiple of the tile (rows are independent, zero-padding harmless).
    tn = min(tile_n, _round_up(max(n, 1), 8))
    n_pad = _round_up(n, tn)
    if n_pad != n:
        x = jnp.pad(x, ((0, n_pad - n), (0, 0)))
    grid = (n_pad // tn,)

    flops = 2 * n_pad * f * (3 * f + c)
    bytes_accessed = (n_pad * f * 4 + n_pad * c * 4 +
                      3 * f * f * 2 + f * c * 2 + 8 * f * 4)

    out = pl.pallas_call(
        hahow_kernel,
        out_shape=jax.ShapeDtypeStruct((n_pad, c), jnp.float32),
        grid=grid,
        in_specs=[
            pl.BlockSpec((8, f), lambda i: (0, 0)),          # bn (VMEM-resident)
            pl.BlockSpec((3, f, f), lambda i: (0, 0, 0)),    # w1..w3 (resident)
            pl.BlockSpec((f, c), lambda i: (0, 0)),          # w4 (resident)
            pl.BlockSpec((tn, f), lambda i: (i, 0)),         # x tile (pipelined)
        ],
        out_specs=pl.BlockSpec((tn, c), lambda i: (i, 0)),
        compiler_params=pltpu.CompilerParams(
            dimension_semantics=("parallel",)),
        cost_estimate=pl.CostEstimate(flops=flops,
                                      transcendentals=0,
                                      bytes_accessed=bytes_accessed),
    )(bn, w123, w4, x)

    return out[:n]


# ----------------------- deterministic parameter init -----------------------

def make_params(key, in_features, course_num):
    layer_dims = [(in_features, in_features)] * 3 + [(in_features, course_num)]
    params = []
    for i, (fin, fout) in enumerate(layer_dims):
        k = jax.random.fold_in(key, i)
        kg, kb, km, kv, kw = jax.random.split(k, 5)
        params.append({
            "gamma": 1.0 + 0.1 * jax.random.normal(kg, (fin,), jnp.float32),
            "beta": 0.1 * jax.random.normal(kb, (fin,), jnp.float32),
            "mean": 0.1 * jax.random.normal(km, (fin,), jnp.float32),
            "var": jnp.abs(jax.random.normal(kv, (fin,), jnp.float32)) + 0.5,
            # nn.Linear weight shape: (out_features, in_features)
            "weight": jax.random.normal(kw, (fout, fin), jnp.float32)
                      * (1.0 / jnp.sqrt(fin)),
        })
    return params


# -------------------------------- references --------------------------------

def reference_forward(x, params, eps=1e-5):
    """Pure f32 JAX reference matching PyTorch eval() semantics exactly."""
    h = x
    for p in params:
        sc = p["gamma"] / jnp.sqrt(p["var"] + eps)
        sh = p["beta"] - p["mean"] * sc
        h = jnp.maximum(h * sc + sh, 0.0)     # BN + Dropout(eval) + ReLU
        h = h @ p["weight"].T                 # Linear(bias=False)
    return h


def reference_prepared(x, bn, w123, w4):
    """Reference doing the identical folded/bf16 math as the kernel."""
    h = x.astype(jnp.float32)
    h = jnp.maximum(h * bn[0:1] + bn[1:2], 0.0)
    h = jnp.dot(h.astype(jnp.bfloat16), w123[0], preferred_element_type=jnp.float32)
    h = jnp.maximum(h + bn[2:3], 0.0)
    h = jnp.dot(h.astype(jnp.bfloat16), w123[1], preferred_element_type=jnp.float32)
    h = jnp.maximum(h + bn[3:4], 0.0)
    h = jnp.dot(h.astype(jnp.bfloat16), w123[2], preferred_element_type=jnp.float32)
    h = jnp.maximum(h + bn[4:5], 0.0)
    h = jnp.dot(h.astype(jnp.bfloat16), w4, preferred_element_type=jnp.float32)
    return h


# --------------------------------- main -------------------------------------

if __name__ == "__main__":
    # cfg: in_features=128, course_num=128, challenge='unseen'
    batch, in_features, course_num = 8, 128, 128

    key = jax.random.PRNGKey(0)
    kx, kp = jax.random.split(key)
    x = jax.random.normal(kx, (batch, in_features), jnp.float32)
    params = make_params(kp, in_features, course_num)

    bn, w123, w4 = prepare_params(params)      # one-time fold, outside hot path

    out = hahow_forward(x, bn, w123, w4)
    out = jax.block_until_ready(out)

    assert out.shape == (batch, course_num)
    # Strict check vs. a reference doing the identical folded bf16 math.
    ref_bf16 = reference_prepared(x, bn, w123, w4)
    assert jnp.allclose(out, ref_bf16, atol=1e-3, rtol=1e-3), "mismatch vs bf16 ref"
    # Loose check vs. the pure-f32 PyTorch-semantics reference (bf16 rounding).
    ref_f32 = reference_forward(x, params)
    assert jnp.allclose(out, ref_f32, atol=1e-1, rtol=1e-1), "mismatch vs f32 ref"

    print("KERNEL_OK")
</pallas_src>

<mosaic_0001>
module attributes {stable_mosaic.version = 11 : i64} {
  func.func @hahow_kernel(%arg0: i32, %arg1: memref<8x128xf32, #tpu.memory_space<vmem>>, %arg2: memref<3x128x128xbf16, #tpu.memory_space<vmem>>, %arg3: memref<128x128xbf16, #tpu.memory_space<vmem>>, %arg4: memref<8x128xf32, #tpu.memory_space<vmem>>, %arg5: memref<8x128xf32, #tpu.memory_space<vmem>>) attributes {dimension_semantics = [#tpu.dimension_semantics<parallel>], iteration_bounds = array<i64: 1>, scalar_prefetch = 0 : i64, scratch_operands = 0 : i64, tpu.core_type = #tpu.core_type<tc>, window_params = [{pipeline_mode = #tpu.pipeline_mode<synchronous>, transform_indices = @transform_0, window_bounds = array<i64: 8, 128>}, {pipeline_mode = #tpu.pipeline_mode<synchronous>, transform_indices = @transform_1, window_bounds = array<i64: 3, 128, 128>}, {pipeline_mode = #tpu.pipeline_mode<synchronous>, transform_indices = @transform_2, window_bounds = array<i64: 128, 128>}, {transform_indices = @transform_3, window_bounds = array<i64: 8, 128>}, {transform_indices = @transform_4, window_bounds = array<i64: 8, 128>}]} {
    %c0 = arith.constant 0 : index
    %c0_0 = arith.constant 0 : index
    %0 = vector.load %arg1[%c0, %c0_0] : memref<8x128xf32, #tpu.memory_space<vmem>>, vector<8x128xf32>
    %1 = vector.extract_strided_slice %0 {offsets = [0, 0], sizes = [1, 128], strides = [1, 1]} : vector<8x128xf32> to vector<1x128xf32>
    %2 = vector.extract_strided_slice %0 {offsets = [1, 0], sizes = [1, 128], strides = [1, 1]} : vector<8x128xf32> to vector<1x128xf32>
    %3 = vector.extract_strided_slice %0 {offsets = [2, 0], sizes = [1, 128], strides = [1, 1]} : vector<8x128xf32> to vector<1x128xf32>
    %4 = vector.extract_strided_slice %0 {offsets = [3, 0], sizes = [1, 128], strides = [1, 1]} : vector<8x128xf32> to vector<1x128xf32>
    %5 = vector.extract_strided_slice %0 {offsets = [4, 0], sizes = [1, 128], strides = [1, 1]} : vector<8x128xf32> to vector<1x128xf32>
    %c0_1 = arith.constant 0 : index
    %c0_2 = arith.constant 0 : index
    %6 = vector.load %arg4[%c0_1, %c0_2] : memref<8x128xf32, #tpu.memory_space<vmem>>, vector<8x128xf32>
    %7 = vector.broadcast %1 : vector<1x128xf32> to vector<8x128xf32>
    %8 = arith.mulf %6, %7 : vector<8x128xf32>
    %9 = vector.broadcast %2 : vector<1x128xf32> to vector<8x128xf32>
    %10 = arith.addf %8, %9 : vector<8x128xf32>
    %cst = arith.constant 0.000000e+00 : f32
    %11 = vector.broadcast %cst : f32 to vector<8x128xf32>
    %12 = arith.maximumf %10, %11 : vector<8x128xf32>
    %13 = arith.truncf %12 : vector<8x128xf32> to vector<8x128xbf16>
    %c0_3 = arith.constant 0 : index
    %c0_4 = arith.constant 0 : index
    %c0_5 = arith.constant 0 : index
    %14 = vector.load %arg2[%c0_3, %c0_4, %c0_5] : memref<3x128x128xbf16, #tpu.memory_space<vmem>>, vector<1x128x128xbf16>
    %15 = vector.shape_cast %14 : vector<1x128x128xbf16> to vector<128x128xbf16>
    %cst_6 = arith.constant dense<0.000000e+00> : vector<8x128xf32>
    %16 = tpu.matmul %13, %15, %cst_6 {dimension_numbers = #tpu.dot_dimension_numbers<[1], [0], [0], [1], [0, 0, 1, 1], [], []>} : vector<8x128xbf16>, vector<128x128xbf16>, vector<8x128xf32> -> vector<8x128xf32>
    %17 = vector.broadcast %3 : vector<1x128xf32> to vector<8x128xf32>
    %18 = arith.addf %16, %17 : vector<8x128xf32>
    %cst_7 = arith.constant 0.000000e+00 : f32
    %19 = vector.broadcast %cst_7 : f32 to vector<8x128xf32>
    %20 = arith.maximumf %18, %19 : vector<8x128xf32>
    %21 = arith.truncf %20 : vector<8x128xf32> to vector<8x128xbf16>
    %c1 = arith.constant 1 : index
    %c0_8 = arith.constant 0 : index
    %c0_9 = arith.constant 0 : index
    %22 = vector.load %arg2[%c1, %c0_8, %c0_9] : memref<3x128x128xbf16, #tpu.memory_space<vmem>>, vector<1x128x128xbf16>
    %23 = vector.shape_cast %22 : vector<1x128x128xbf16> to vector<128x128xbf16>
    %cst_10 = arith.constant dense<0.000000e+00> : vector<8x128xf32>
    %24 = tpu.matmul %21, %23, %cst_10 {dimension_numbers = #tpu.dot_dimension_numbers<[1], [0], [0], [1], [0, 0, 1, 1], [], []>} : vector<8x128xbf16>, vector<128x128xbf16>, vector<8x128xf32> -> vector<8x128xf32>
    %25 = vector.broadcast %4 : vector<1x128xf32> to vector<8x128xf32>
    %26 = arith.addf %24, %25 : vector<8x128xf32>
    %cst_11 = arith.constant 0.000000e+00 : f32
    %27 = vector.broadcast %cst_11 : f32 to vector<8x128xf32>
    %28 = arith.maximumf %26, %27 : vector<8x128xf32>
    %29 = arith.truncf %28 : vector<8x128xf32> to vector<8x128xbf16>
    %c2 = arith.constant 2 : index
    %c0_12 = arith.constant 0 : index
    %c0_13 = arith.constant 0 : index
    %30 = vector.load %arg2[%c2, %c0_12, %c0_13] : memref<3x128x128xbf16, #tpu.memory_space<vmem>>, vector<1x128x128xbf16>
    %31 = vector.shape_cast %30 : vector<1x128x128xbf16> to vector<128x128xbf16>
    %cst_14 = arith.constant dense<0.000000e+00> : vector<8x128xf32>
    %32 = tpu.matmul %29, %31, %cst_14 {dimension_numbers = #tpu.dot_dimension_numbers<[1], [0], [0], [1], [0, 0, 1, 1], [], []>} : vector<8x128xbf16>, vector<128x128xbf16>, vector<8x128xf32> -> vector<8x128xf32>
    %33 = vector.broadcast %5 : vector<1x128xf32> to vector<8x128xf32>
    %34 = arith.addf %32, %33 : vector<8x128xf32>
    %cst_15 = arith.constant 0.000000e+00 : f32
    %35 = vector.broadcast %cst_15 : f32 to vector<8x128xf32>
    %36 = arith.maximumf %34, %35 : vector<8x128xf32>
    %37 = arith.truncf %36 : vector<8x128xf32> to vector<8x128xbf16>
    %c0_16 = arith.constant 0 : index
    %c0_17 = arith.constant 0 : index
    %38 = vector.load %arg3[%c0_16, %c0_17] : memref<128x128xbf16, #tpu.memory_space<vmem>>, vector<128x128xbf16>
    %cst_18 = arith.constant dense<0.000000e+00> : vector<8x128xf32>
    %39 = tpu.matmul %37, %38, %cst_18 {dimension_numbers = #tpu.dot_dimension_numbers<[1], [0], [0], [1], [0, 0, 1, 1], [], []>} : vector<8x128xbf16>, vector<128x128xbf16>, vector<8x128xf32> -> vector<8x128xf32>
    %c0_19 = arith.constant 0 : index
    %c0_20 = arith.constant 0 : index
    %40 = vector.load %arg5[%c0_19, %c0_20] : memref<8x128xf32, #tpu.memory_space<vmem>>, vector<8x128xf32>
    tpu.vector_store %arg5[%c0_19, %c0_20], %39 {strides = array<i32>} : memref<8x128xf32, #tpu.memory_space<vmem>>, vector<8x128xf32>,
    return
  }
  func.func @transform_0(%arg0: i32) -> (i32, i32) {
    %c0_i32 = arith.constant 0 : i32
    %c0_i32_0 = arith.constant 0 : i32
    %c0_i32_1 = arith.constant 0 : i32
    return %c0_i32, %c0_i32_0 : i32, i32
  }
  func.func @transform_1(%arg0: i32) -> (i32, i32, i32) {
    %c0_i32 = arith.constant 0 : i32
    %c0_i32_0 = arith.constant 0 : i32
    %c0_i32_1 = arith.constant 0 : i32
    %c0_i32_2 = arith.constant 0 : i32
    return %c0_i32, %c0_i32_0, %c0_i32_1 : i32, i32, i32
  }
  func.func @transform_2(%arg0: i32) -> (i32, i32) {
    %c0_i32 = arith.constant 0 : i32
    %c0_i32_0 = arith.constant 0 : i32
    %c0_i32_1 = arith.constant 0 : i32
    return %c0_i32, %c0_i32_0 : i32, i32
  }
  func.func @transform_3(%arg0: i32) -> (i32, i32) {
    %c0_i32 = arith.constant 0 : i32
    %c0_i32_0 = arith.constant 0 : i32
    return %arg0, %c0_i32 : i32, i32
  }
  func.func @transform_4(%arg0: i32) -> (i32, i32) {
    %c0_i32 = arith.constant 0 : i32
    %c0_i32_0 = arith.constant 0 : i32
    return %arg0, %c0_i32 : i32, i32
  }
}

</mosaic_0001>

<bundles_post_ra>
// kernel: hahow_forward.1
= control target key start
LH: loop header
LB: loop body
LE: loop exit
PB: predicated region body
PF: predicated region fallthrough
CT: control target
= control target key end

     0   :  { %9 = vsyncpa [#allocation3], 0  ;;  %s999_s0 = inlined_call_operand.hbm [shape: f32[8,128], index: 0, kind: input, shape index: {}]   ;;  %s1000_s1 = inlined_call_operand.hbm [shape: bf16[3,128,128], index: 1, kind: input, shape index: {}]   ;;  %s1001_s2 = inlined_call_operand.hbm [shape: bf16[128,128], index: 2, kind: input, shape index: {}]   ;;  %s1002_s3 = inlined_call_operand.hbm [shape: f32[8,128], index: 3, kind: input, shape index: {}]   ;;  %s1003_s4 = inlined_call_operand.hbm [shape: f32[8,128], index: 4, kind: output, shape index: {}]  }
   0x1   :  { %10 = vsyncpa [#allocation6], 0 }
   0x2   :  { %11 = vsyncpa [#allocation9], 0 }
   0x3   :  { %12 = vsyncpa [#allocation4], 0  ;;  %s845_s15 = smov [#allocation5]   ;;  %s727_s19 = scalar_lea.hbm %s1000_s1, 3072 }
   0x4   :  { %s28_s16 = sshll.u32 %s845_s15, 4  ;;  %p728_p0 = scmp.ne.s32.totalorder %s1000_s1, %s727_s19  ;;  %s29_s16 = int_to_ptr.vmem [resolvable:$true] %s28_s16 }
   0x5   :  { %p731_p1 = scmp.lt.u32.totalorder %s727_s19, %s1000_s1 }
   0x7   :  { %p733_p2 = pnand %p731_p1, %p728_p0 }
   0x9   :  { %736 = shalt.err (!%p733_p2)
}
   0xa   :  { %s737_s24 = scalar_lea.vmem %s29_s16, 3072  ;;  %p742_p4 = scmp.lt.s32.totalorder %s29_s16, %s29_s16 }
   0xb   :  { %p738_p3 = scmp.ne.s32.totalorder %s29_s16, %s737_s24  ;;  %p743_p5 = scmp.lt.s32.totalorder %s737_s24, %s737_s24 }
   0xd   :  { %p744_p6 = por %p743_p5, %p742_p4 }
   0xf   :  { %p745_p7 = pnand %p744_p6, %p738_p3 }
  0x11   :  { %748 = shalt.err (!%p745_p7)
}
  0x12   :  { %s846_s25 = smov 64   ;;  %s847_s26 = smov 4  }
  0x13   :  { %34 = dma.hbm_to_vmem [thread:$0]  %s1000_s1, 3072, %s29_s16, [#allocation6], %s846_s25, %s846_s25, %s847_s26  }
  0x14   :  { %s848_s29 = smov [#allocation2]   ;;  %s849_s5 = smov [#allocation7]  }
  0x15   :  { %s19_s30 = sshll.u32 %s848_s29, 4  ;;  %s40_s6 = sshll.u32 %s849_s5, 4  ;;  %s20_s30 = int_to_ptr.vmem [resolvable:$true] %s19_s30  ;;  %s41_s6 = int_to_ptr.vmem [resolvable:$true] %s40_s6 }
  0x16   :  { %s749_s9 = scalar_lea.hbm %s999_s0, 128 }
  0x17   :  { %p750_p8 = scmp.ne.s32.totalorder %s999_s0, %s749_s9  ;;  %p753_p9 = scmp.lt.u32.totalorder %s749_s9, %s999_s0 }
  0x19   :  { %p755_p10 = pnand %p753_p9, %p750_p8 }
  0x1b   :  { %758 = shalt.err (!%p755_p10)
}
  0x1c   :  { %s759_s1 = scalar_lea.vmem %s20_s30, 128  ;;  %p764_p12 = scmp.lt.s32.totalorder %s20_s30, %s20_s30 }
  0x1d   :  { %p760_p11 = scmp.ne.s32.totalorder %s20_s30, %s759_s1  ;;  %p765_p13 = scmp.lt.s32.totalorder %s759_s1, %s759_s1 }
  0x1f   :  { %p766_p0 = por %p765_p13, %p764_p12 }
  0x21   :  { %p767_p1 = pnand %p766_p0, %p760_p11 }
  0x23   :  { %770 = shalt.err (!%p767_p1)
}
  0x24   :  { %22 = dma.hbm_to_vmem [thread:$0]  %s999_s0, 128, %s20_s30, [#allocation3]  }
  0x25   :  { %s771_s18 = scalar_lea.hbm %s1001_s2, 1024 }
  0x26   :  { %p772_p2 = scmp.ne.s32.totalorder %s1001_s2, %s771_s18  ;;  %p775_p3 = scmp.lt.u32.totalorder %s771_s18, %s1001_s2 }
  0x28   :  { %p777_p4 = pnand %p775_p3, %p772_p2 }
  0x2a   :  { %780 = shalt.err (!%p777_p4)
}
  0x2b   :  { %s781_s23 = scalar_lea.vmem %s41_s6, 1024  ;;  %p786_p6 = scmp.lt.s32.totalorder %s41_s6, %s41_s6 }
  0x2c   :  { %p782_p5 = scmp.ne.s32.totalorder %s41_s6, %s781_s23  ;;  %p787_p7 = scmp.lt.s32.totalorder %s781_s23, %s781_s23 }
  0x2e   :  { %p788_p8 = por %p787_p7, %p786_p6 }
  0x30   :  { %p789_p9 = pnand %p788_p8, %p782_p5 }
  0x32   :  { %792 = shalt.err (!%p789_p9)
}
  0x33   :  { %46 = dma.hbm_to_vmem [thread:$0]  %s1001_s2, 1024, %s41_s6, [#allocation6], %s846_s25, %s846_s25, %s847_s26  }
  0x34   :  { %s850_s27 = smov [#allocation8]   ;;  %s793_s5 = scalar_lea.hbm %s1002_s3, 128 }
  0x35   :  { %s53_s28 = sshll.u32 %s850_s27, 4  ;;  %p794_p10 = scmp.ne.s32.totalorder %s1002_s3, %s793_s5  ;;  %s54_s28 = int_to_ptr.vmem [resolvable:$true] %s53_s28 }
  0x36   :  { %p797_p11 = scmp.lt.u32.totalorder %s793_s5, %s1002_s3 }
  0x38   :  { %p799_p12 = pnand %p797_p11, %p794_p10 }
  0x3a   :  { %802 = shalt.err (!%p799_p12)
}
  0x3b   :  { %s803_s11 = scalar_lea.vmem %s54_s28, 128  ;;  %p808_p0 = scmp.lt.s32.totalorder %s54_s28, %s54_s28 }
  0x3c   :  { %p804_p13 = scmp.ne.s32.totalorder %s54_s28, %s803_s11  ;;  %p809_p1 = scmp.lt.s32.totalorder %s803_s11, %s803_s11 }
  0x3e   :  { %p810_p2 = por %p809_p1, %p808_p0 }
  0x40   :  { %p811_p3 = pnand %p810_p2, %p804_p13 }
  0x42   :  { %814 = shalt.err (!%p811_p3)
}
  0x43   :  { %56 = dma.hbm_to_vmem [thread:$0]  %s1002_s3, 128, %s54_s28, [#allocation9]  }
  0x44   :  { %837 = dma.done.wait [#allocation3], 128  }
  0x45   :  { %838 = vsyncadd [#allocation3], 4294967168 }
  0x46   :  { %839 = dma.done.wait [#allocation6], 4096  }
  0x47   :  { %840 = vsyncadd [#allocation6], 4294963200 }
  0x48   :  { %841 = dma.done.wait [#allocation9], 128  }
  0x49   :  { %842 = vsyncadd [#allocation9], 4294967168  ;;  %v851_v0 = vmov 0.0   ;;  %vm852_vm0 = vmmov 0   ;;  %v72_v1 = vlaneseq  ;;  %v695_v2 = vld [vmem:[#allocation5] sm:$0xff]   ;;  %v696_v4 = vld [vmem:[#allocation5 + $0x8] sm:$0xff]  }
  0x4a   :  { %606 = vmatprep.subr.bf16.mxu0 %v851_v0  ;;  %622 = vmatprep.mubr.msk.bf16.mxu0 %vm852_vm0, %v851_v0  ;;  %v697_v7 = vld [vmem:[#allocation5 + $0x10] sm:$0xff]   ;;  %v945_v8 = vld [vmem:[#allocation2] sm:$0xff]  ;;  %v71_v9 = vld [vmem:[#allocation8] sm:$0xff]  ;;  %s853_s3 = smov [#allocation10]  }
  0x4b   :  { %626 = vmatprep.subr.bf16.mxu1 %v851_v0  ;;  %642 = vmatprep.mubr.msk.bf16.mxu1 %vm852_vm0, %v851_v0  ;;  %v939_v3 = vshrl.u32 %v72_v1, 7  ;;  %v703_v12 = vld [vmem:[#allocation5 + $0x40] sm:$0xff]   ;;  %v698_v13 = vld [vmem:[#allocation5 + $0x18] sm:$0xff]   ;;  %v704_v15 = vld [vmem:[#allocation5 + $0x48] sm:$0xff]   ;;  %s527_s26 = sshll.u32 %s853_s3, 4  ;;  %s528_s26 = int_to_ptr.vmem [resolvable:$true] %s527_s26 }
  0x4c   :  { %607 = vmatpush3.bf16.msra.mxu0 %v695_v2  ;;  %627 = vmatpush3.bf16.msra.mxu1 %v703_v12  ;;  %v699_v17 = vld [vmem:[#allocation5 + $0x20] sm:$0xff]   ;;  %v705_v19 = vld [vmem:[#allocation5 + $0x50] sm:$0xff]   ;;  %v700_v20 = vld [vmem:[#allocation5 + $0x28] sm:$0xff]   ;;  %s815_s6 = scalar_lea.vmem %s528_s26, 128  ;;  %p820_p5 = scmp.lt.s32.totalorder %s528_s26, %s528_s26 }
  0x4d   :  { %608 = vmatprep.subr.bf16.mxu0 %v851_v0  ;;  %v74_v5 = vsub.s32 0, %v939_v3  ;;  %v79_v6 = vsub.s32 1, %v939_v3  ;;  %628 = vmatprep.subr.bf16.mxu1 %v851_v0  ;;  %v706_v21 = vld [vmem:[#allocation5 + $0x58] sm:$0xff]   ;;  %v701_v22 = vld [vmem:[#allocation5 + $0x30] sm:$0xff]   ;;  %v707_v23 = vld [vmem:[#allocation5 + $0x60] sm:$0xff]   ;;  %v102_v35 = vsub.s32 2, %v939_v3  ;;  %p816_p4 = scmp.ne.s32.totalorder %s528_s26, %s815_s6  ;;  %p821_p6 = scmp.lt.s32.totalorder %s815_s6, %s815_s6 }
  0x4e   :  { %v702_v24 = vld [vmem:[#allocation5 + $0x38] sm:$0xff]   ;;  %v708_v25 = vld [vmem:[#allocation5 + $0x68] sm:$0xff]   ;;  %v709_v27 = vld [vmem:[#allocation5 + $0x70] sm:$0xff]   ;;  %v213_v52 = vsub.s32 3, %v939_v3  ;;  %v324_v63 = vsub.s32 4, %v939_v3 }
  0x4f   :  { %v75_v10 = vrot.slane %v945_v8, %v74_v5  ;;  %v80_v11 = vrot.slane %v945_v8, %v79_v6  ;;  %v710_v28 = vld [vmem:[#allocation5 + $0x78] sm:$0xff]   ;;  %v711_v29 = vld [vmem:[#allocation5 + $0x80] sm:$0xff]   ;;  %v712_v30 = vld [vmem:[#allocation5 + $0x88] sm:$0xff]   ;;  %v103_v36 = vrot.slane %v945_v8, %v102_v35  ;;  %p822_p7 = por %p821_p6, %p820_p5 }
  0x50   :  { %609 = vmatpush3.bf16.msra.mxu0 %v696_v4  ;;  %629 = vmatpush3.bf16.msra.mxu1 %v704_v15  ;;  %v713_v31 = vld [vmem:[#allocation5 + $0x90] sm:$0xff]   ;;  %v714_v32 = vld [vmem:[#allocation5 + $0x98] sm:$0xff]   ;;  %v715_v33 = vld [vmem:[#allocation5 + $0xa0] sm:$0xff]   ;;  %v214_v53 = vrot.slane %v945_v8, %v213_v52  ;;  %v325_v1 = vrot.slane %v945_v8, %v324_v63 }
  0x51   :  { %610 = vmatprep.subr.bf16.mxu0 %v851_v0  ;;  %v76_v14 = vmul.f32 %v75_v10, %v71_v9  ;;  %630 = vmatprep.subr.bf16.mxu1 %v851_v0  ;;  %v716_v34 = vld [vmem:[#allocation5 + $0xa8] sm:$0xff]   ;;  %v717_v44 = vld [vmem:[#allocation5 + $0xb0] sm:$0xff]   ;;  %v718_v45 = vld [vmem:[#allocation5 + $0xb8] sm:$0xff]   ;;  %p823_p8 = pnand %p822_p7, %p816_p4 }
  0x52   :  { %v719_v46 = vld [vmem:[#allocation7] sm:$0xff]   ;;  %v720_v47 = vld [vmem:[#allocation7 + $0x8] sm:$0xff]   ;;  %v721_v48 = vld [vmem:[#allocation7 + $0x10] sm:$0xff]  }
  0x53   :  { %v81_v16 = vadd.f32 %v80_v11, %v76_v14  ;;  %v722_v49 = vld [vmem:[#allocation7 + $0x18] sm:$0xff]   ;;  %v723_v50 = vld [vmem:[#allocation7 + $0x20] sm:$0xff]   ;;  %v724_v51 = vld [vmem:[#allocation7 + $0x28] sm:$0xff]  }
  0x54   :  { %611 = vmatpush3.bf16.msra.mxu0 %v697_v7  ;;  %631 = vmatpush3.bf16.msra.mxu1 %v705_v19  ;;  %v725_v61 = vld [vmem:[#allocation7 + $0x30] sm:$0xff]   ;;  %v726_v62 = vld [vmem:[#allocation7 + $0x38] sm:$0xff]  }
  0x55   :  { %612 = vmatprep.subr.bf16.mxu0 %v851_v0  ;;  %v82_v18 = vmax.f32 %v81_v16, 0.0  ;;  %632 = vmatprep.subr.bf16.mxu1 %v851_v0 }
  0x57   :  { %v83_v26 = vpack.c.bf16 %v82_v18, %v82_v18 }
  0x58   :  { %613 = vmatpush3.bf16.msra.mxu0 %v698_v13  ;;  %633 = vmatpush3.bf16.msra.mxu1 %v706_v21 }
  0x59   :  { %614 = vmatprep.subr.bf16.mxu0 %v851_v0  ;;  %634 = vmatprep.subr.bf16.mxu1 %v851_v0 }
  0x5c   :  { %615 = vmatpush3.bf16.msra.mxu0 %v699_v17  ;;  %635 = vmatpush3.bf16.msra.mxu1 %v707_v23 }
  0x5d   :  { %616 = vmatprep.subr.bf16.mxu0 %v851_v0  ;;  %636 = vmatprep.subr.bf16.mxu1 %v851_v0 }
  0x60   :  { %617 = vmatpush3.bf16.msra.mxu0 %v700_v20  ;;  %637 = vmatpush3.bf16.msra.mxu1 %v708_v25 }
  0x61   :  { %618 = vmatprep.subr.bf16.mxu0 %v851_v0  ;;  %638 = vmatprep.subr.bf16.mxu1 %v851_v0 }
  0x64   :  { %619 = vmatpush3.bf16.msra.mxu0 %v701_v22  ;;  %639 = vmatpush3.bf16.msra.mxu1 %v709_v27 }
  0x65   :  { %620 = vmatprep.subr.bf16.mxu0 %v851_v0  ;;  %640 = vmatprep.subr.bf16.mxu1 %v851_v0 }
  0x68   :  { %621 = vmatpush3.bf16.msra.mxu0 %v702_v24  ;;  %641 = vmatpush3.bf16.msra.mxu1 %v710_v28 }
  0x69   :  { %646 = vmatprep.subr.bf16.mxu0 %v851_v0  ;;  %666 = vmatprep.subr.bf16.mxu1 %v851_v0 }
  0x6b   :  { %623 = vmatmul.mubr.bf16.vlgmr.msra.gmra.mrb[0].mxu0 %v83_v26 }
  0x6c   :  { %662 = vmatprep.mubr.msk.bf16.mxu0 %vm852_vm0, %v851_v0  ;;  %647 = vmatpush3.bf16.msra.mxu0 %v711_v29 }
  0x6d   :  { %648 = vmatprep.subr.bf16.mxu0 %v851_v0 }
  0x70   :  { %649 = vmatpush3.bf16.msra.mxu0 %v712_v30 }
  0x71   :  { %650 = vmatprep.subr.bf16.mxu0 %v851_v0 }
  0x74   :  { %651 = vmatpush3.bf16.msra.mxu0 %v713_v31 }
  0x75   :  { %652 = vmatprep.subr.bf16.mxu0 %v851_v0 }
  0x78   :  { %653 = vmatpush3.bf16.msra.mxu0 %v714_v32 }
  0x79   :  { %654 = vmatprep.subr.bf16.mxu0 %v851_v0 }
  0x7c   :  { %655 = vmatpush3.bf16.msra.mxu0 %v715_v33 }
  0x7d   :  { %656 = vmatprep.subr.bf16.mxu0 %v851_v0 }
  0x80   :  { %657 = vmatpush3.bf16.msra.mxu0 %v716_v34 }
  0x81   :  { %658 = vmatprep.subr.bf16.mxu0 %v851_v0 }
  0x84   :  { %659 = vmatpush3.bf16.msra.mxu0 %v717_v44 }
  0x85   :  { %660 = vmatprep.subr.bf16.mxu0 %v851_v0 }
  0x88   :  { %661 = vmatpush3.bf16.msra.mxu0 %v718_v45 }
 0x13e   :  { %v186_v37 = vpop.f32.mrb[0].mxu0 }
 0x13f   :  { %v187_v38 = vadd.f32 %v186_v37, %v103_v36  ;;  %v624_v39 = vpop.f32.mrb[1].mxu0 }
 0x140   :  { %v189_v40 = vpop.f32.mrb[2].mxu0 }
 0x141   :  { %v192_v41 = vmax.f32 %v187_v38, 0.0  ;;  %v625_v42 = vpop.f32.mrb[3].mxu0 }
 0x143   :  { %v193_v43 = vpack.c.bf16 %v192_v41, %v192_v41 }
 0x145   :  { %643 = vmatmul.mubr.bf16.vlgmr.msra.gmra.mrb[0].mxu1 %v193_v43 }
 0x146   :  { %682 = vmatprep.mubr.msk.bf16.mxu1 %vm852_vm0, %v851_v0  ;;  %667 = vmatpush3.bf16.msra.mxu1 %v719_v46 }
 0x147   :  { %668 = vmatprep.subr.bf16.mxu1 %v851_v0 }
 0x14a   :  { %669 = vmatpush3.bf16.msra.mxu1 %v720_v47 }
 0x14b   :  { %670 = vmatprep.subr.bf16.mxu1 %v851_v0 }
 0x14e   :  { %671 = vmatpush3.bf16.msra.mxu1 %v721_v48 }
 0x14f   :  { %672 = vmatprep.subr.bf16.mxu1 %v851_v0 }
 0x152   :  { %673 = vmatpush3.bf16.msra.mxu1 %v722_v49 }
 0x153   :  { %674 = vmatprep.subr.bf16.mxu1 %v851_v0 }
 0x156   :  { %675 = vmatpush3.bf16.msra.mxu1 %v723_v50 }
 0x157   :  { %676 = vmatprep.subr.bf16.mxu1 %v851_v0 }
 0x15a   :  { %677 = vmatpush3.bf16.msra.mxu1 %v724_v51 }
 0x15b   :  { %678 = vmatprep.subr.bf16.mxu1 %v851_v0 }
 0x15e   :  { %679 = vmatpush3.bf16.msra.mxu1 %v725_v61 }
 0x15f   :  { %680 = vmatprep.subr.bf16.mxu1 %v851_v0 }
 0x162   :  { %681 = vmatpush3.bf16.msra.mxu1 %v726_v62 }
 0x218   :  { %v297_v54 = vpop.f32.mrb[0].mxu1 }
 0x219   :  { %v298_v55 = vadd.f32 %v297_v54, %v214_v53  ;;  %v644_v56 = vpop.f32.mrb[1].mxu1 }
 0x21a   :  { %v300_v57 = vpop.f32.mrb[2].mxu1 }
 0x21b   :  { %v303_v58 = vmax.f32 %v298_v55, 0.0  ;;  %v645_v59 = vpop.f32.mrb[3].mxu1 }
 0x21d   :  { %v304_v60 = vpack.c.bf16 %v303_v58, %v303_v58 }
 0x21f   :  { %663 = vmatmul.mubr.bf16.vlgmr.msra.gmra.mrb[4].mxu0 %v304_v60 }
 0x2f2   :  { %v408_v2 = vpop.f32.mrb[4].mxu0 }
 0x2f3   :  { %v409_v4 = vadd.f32 %v408_v2, %v325_v1  ;;  %v664_v5 = vpop.f32.mrb[5].mxu0 }
 0x2f4   :  { %v411_v6 = vpop.f32.mrb[6].mxu0 }
 0x2f5   :  { %v414_v7 = vmax.f32 %v409_v4, 0.0  ;;  %v665_v9 = vpop.f32.mrb[7].mxu0 }
 0x2f7   :  { %v415_v10 = vpack.c.bf16 %v414_v7, %v414_v7 }
 0x2f9   :  { %683 = vmatmul.mubr.bf16.vlgmr.msra.gmra.mrb[4].mxu1 %v415_v10 }
 0x3cc   :  { %v514_v11 = vpop.f32.mrb[4].mxu1 }
 0x3cd   :  { %520 = vst [vmem:[#allocation10] sm:$0xff] %v514_v11  ;;  %v684_v0 = vpop.f32.mrb[5].mxu1 }
 0x3ce   :  { %v517_v12 = vpop.f32.mrb[6].mxu1 }
 0x3cf   :  { %826 = shalt.err (!%p823_p8)
}
 0x3d0   :  { %s827_s1 = scalar_lea.hbm %s1003_s4, 128 }
 0x3d1   :  { %p828_p9 = scmp.ne.s32.totalorder %s1003_s4, %s827_s1  ;;  %p831_p10 = scmp.lt.u32.totalorder %s827_s1, %s1003_s4 }
 0x3d3   :  { %p833_p11 = pnand %p831_p10, %p828_p9 }
 0x3d5   :  { %836 = shalt.err (!%p833_p11)
}
 0x3d6   :  { %530 = dma.vmem_to_hbm [thread:$0]  %s528_s26, 128, %s1003_s4, [#allocation4]   ;;  %v685_v3 = vpop.f32.mrb[7].mxu1 }
 0x3d7   :  { %843 = dma.done.wait [#allocation4], 128  }
 0x3d8   :  { %844 = vsyncadd [#allocation4], 4294967168 }
 0x3d9   :  { %534 = vsyncpa [#allocation3], 1 }
 0x3da   :  { %535 = vsyncpa [#allocation6], 1 }
 0x3db   :  { %536 = vsyncpa [#allocation9], 1 }
 0x3dc   :  { %537 = vsyncpa [#allocation4], 1 }

</bundles_post_ra>
